<compile_context>
chip_gen: v7x
topology: tpu7x:2x2x1
jax: 0.10.0
libtpu: 0.0.40
codegen_flags: <defaults>
</compile_context>

<pallas_src>
import functools

import jax
import jax.numpy as jnp
from jax import lax
from jax.experimental import pallas as pl
from jax.experimental.pallas import tpu as pltpu

_LANE = 128
_SUB = 8  # sublane rows per f32 vreg; chunk size of the fused in-register loop


def _hybrid_loss_kernel(x_ref, t_ref, dice_ref, focal_ref, *,
                        num_classes, gamma, gamma_int, ignore_index,
                        num_pixels, ts, tiles_per_core, num_tiles,
                        has_pad, maybe_inactive, unroll):
    """One (core-split, batch image, pixel tile) grid step.

    x_ref    : (1, C, ts, 128)        logits (native dtype)
    t_ref    : (1, ts, 128)           integer labels
    dice_ref : (1, 1, 3, C, 8, 128)   partials [intersection, softmax_sum, onehot_sum]
    focal_ref: (1, 1, 2, 8, 128)      partials [focal_sum, valid_count]
    """
    C = num_classes
    t_idx = pl.program_id(2)
    g_tile = pl.program_id(0) * tiles_per_core + t_idx      # global pixel tile

    # zero the resident accumulators on the first tile of each (core, image)
    @pl.when(t_idx == 0)
    def _():
        dice_ref[...] = jnp.zeros(dice_ref.shape, dice_ref.dtype)
        focal_ref[...] = jnp.zeros(focal_ref.shape, focal_ref.dtype)

    n_chunks = ts // _SUB
    if has_pad:
        row_iota = lax.broadcasted_iota(jnp.int32, (_SUB, _LANE), 0)
        lane_iota = lax.broadcasted_iota(jnp.int32, (_SUB, _LANE), 1)
    base_row = g_tile * ts

    def _accumulate():
        zero = jnp.zeros((_SUB, _LANE), jnp.float32)
        carry0 = (zero, zero,
                  tuple(zero for _ in range(C)),
                  tuple(zero for _ in range(C)),
                  tuple(zero for _ in range(C)))

        def chunk(j, carry):
            fsum, vcnt, inter, ssum, osum = carry
            r0 = pl.multiple_of(j * _SUB, _SUB)
            rows = pl.ds(r0, _SUB)

            t = t_ref[0, rows, :].astype(jnp.int32)               # (8,128)
            valid = t != ignore_index
            if has_pad:
                gidx = (base_row + r0 + row_iota) * _LANE + lane_iota
                real = gidx < num_pixels
                realf = real.astype(jnp.float32)
                valid = jnp.logical_and(valid, real)
            validf = valid.astype(jnp.float32)
            tc = jnp.clip(jnp.where(valid, t, 0), 0, C - 1)

            # pass A: channel max in the logits' native dtype (cast once)
            m_nat = x_ref[0, 0, rows, :]
            for c in range(1, C):
                m_nat = jnp.maximum(m_nat, x_ref[0, c, rows, :])
            m = m_nat.astype(jnp.float32)
            if has_pad:
                m = jnp.where(real, m, 0.0)                       # garbage-proof tail

            # pass B: exps + denom + target-class exp, all register resident
            denom = jnp.zeros((_SUB, _LANE), jnp.float32)
            ex_t = jnp.zeros((_SUB, _LANE), jnp.float32)
            exps = []
            for c in range(C):
                xc = x_ref[0, c, rows, :].astype(jnp.float32)
                if has_pad:
                    xc = jnp.where(real, xc, 0.0)
                e = jnp.exp(xc - m)
                exps.append(e)
                denom = denom + e
                ex_t = jnp.where(tc == c, e, ex_t)

            inv = pl.reciprocal(denom, approx=True)               # EUP vrcp
            inv = inv * (2.0 - denom * inv)                       # one Newton step
            pt = ex_t * inv
            # ce = -log(pt) == (m + log(denom)) - x_t; drops the x_t select chain
            ce = -jnp.log(jnp.maximum(pt, 1e-38)) * validf
            one_m_pt = jnp.maximum(1.0 - pt, 0.0)
            if gamma_int is not None:                             # integer gamma fast path
                if gamma_int == 0:
                    pw = jnp.ones_like(one_m_pt)
                else:
                    pw = one_m_pt
                    for _ in range(gamma_int - 1):
                        pw = pw * one_m_pt
            else:
                pw = one_m_pt ** gamma
            focal = pw * ce                                       # alpha hoisted to JAX

            # pass C: per-class dice partials
            inv_d = inv * realf if has_pad else inv               # pad mask folded once
            new_inter, new_ssum, new_osum = [], [], []
            for c in range(C):
                soft_c = exps[c] * inv_d
                ohm = (tc == c).astype(jnp.float32) * validf
                new_inter.append(inter[c] + soft_c * ohm)
                new_ssum.append(ssum[c] + soft_c)
                new_osum.append(osum[c] + ohm)

            return (fsum + focal, vcnt + validf,
                    tuple(new_inter), tuple(new_ssum), tuple(new_osum))

        fsum, vcnt, inter, ssum, osum = lax.fori_loop(
            0, n_chunks, chunk, carry0, unroll=unroll)

        focal_ref[0, 0, 0, :, :] += fsum
        focal_ref[0, 0, 1, :, :] += vcnt
        for c in range(C):
            dice_ref[0, 0, 0, c, :, :] += inter[c]
            dice_ref[0, 0, 1, c, :, :] += ssum[c]
            dice_ref[0, 0, 2, c, :, :] += osum[c]

    if maybe_inactive:
        pl.when(g_tile < num_tiles)(_accumulate)
    else:
        _accumulate()


def _vmem_capacity_bytes():
    try:
        info = pltpu.get_tpu_info()
        cap = getattr(info, "vmem_capacity_bytes", None)
        if cap:
            return int(cap)
    except Exception:
        pass
    return 0  # unknown -> use conservative (v7x-safe) sizing


def hybrid_loss(logits, targets, *, weight_focal=0.5, weight_dice=0.5,
                alpha=0.25, gamma=2, smooth=1.0, ignore_index=255):
    """loss = weight_focal * focal(logits, targets) + weight_dice * dice(...)."""
    B, C, H, W = logits.shape
    assert targets.shape == (B, H, W)
    P = H * W

    # keep narrow dtypes; only guard against >32-bit inputs
    if logits.dtype.itemsize > 4:
        logits = logits.astype(jnp.float32)
    if (not jnp.issubdtype(targets.dtype, jnp.integer)
            or targets.dtype.itemsize > 4):
        targets = targets.astype(jnp.int32)
    in_b = logits.dtype.itemsize
    tgt_b = targets.dtype.itemsize

    # generation-aware VMEM sizing: v7x has 64 MiB per TensorCore, v5e/v6e 128 MiB
    cap = _vmem_capacity_bytes()
    if cap > 64 * 1024 * 1024:
        budget, vmem_limit = 28 * 1024 * 1024, 72 * 1024 * 1024
    else:
        budget, vmem_limit = 14 * 1024 * 1024, 40 * 1024 * 1024

    # pixel axis -> (s sublane rows) x 128 lanes, s a multiple of 8
    s_real = -(-P // _LANE)
    s = -(-max(s_real, _SUB) // _SUB) * _SUB
    p_pad = s * _LANE

    per_row = 2 * _LANE * (C * in_b + tgt_b)     # double-buffered input bytes per row
    ts_max = max(_SUB, (budget // per_row) // _SUB * _SUB)

    if s <= ts_max:
        ts = s                                   # whole image in one tile
    else:
        ts = 0
        d = ts_max
        while d >= _SUB:                         # largest 8-multiple divisor of s
            if s % d == 0:
                ts = d
                break
            d -= _SUB
        if ts == 0:
            ts = ts_max                          # ragged last tile, masked in-kernel
    grid_t = -(-s // ts)
    has_pad = (p_pad != P) or (grid_t * ts != s)

    x = logits.reshape(B, C, P)
    t = targets.reshape(B, P)
    if p_pad != P:
        # only hit when H*W is not a multiple of 1024 pixels (one HBM copy)
        x = jnp.pad(x, ((0, 0), (0, 0), (0, p_pad - P)))
        t = jnp.pad(t, ((0, 0), (0, p_pad - P)))
    x = x.reshape(B, C, s, _LANE)
    t = t.reshape(B, s, _LANE)

    # split the pixel-tile range over both v7x TensorCores when the batch axis
    # alone cannot keep two cores busy (harmless on v5e/v6e)
    n_split = 2 if (B == 1 and grid_t >= 2) else 1
    half = -(-grid_t // n_split)
    maybe_inactive = half * n_split != grid_t

    gamma_f = float(gamma)
    gamma_int = int(gamma_f) if (gamma_f.is_integer() and gamma_f >= 0) else None

    n_chunks = ts // _SUB
    unroll = min(n_chunks, 4)

    kernel = functools.partial(
        _hybrid_loss_kernel,
        num_classes=C, gamma=gamma_f, gamma_int=gamma_int,
        ignore_index=int(ignore_index), num_pixels=P, ts=ts,
        tiles_per_core=half, num_tiles=grid_t,
        has_pad=has_pad, maybe_inactive=maybe_inactive, unroll=unroll)

    last = grid_t - 1

    def x_map(cc, b, i):
        return (b, 0, jnp.minimum(cc * half + i, last), 0)

    def t_map(cc, b, i):
        return (b, jnp.minimum(cc * half + i, last), 0)

    dice_parts, focal_parts = pl.pallas_call(
        kernel,
        out_shape=(
            jax.ShapeDtypeStruct((n_split, B, 3, C, _SUB, _LANE), jnp.float32),
            jax.ShapeDtypeStruct((n_split, B, 2, _SUB, _LANE), jnp.float32)),
        grid_spec=pltpu.PrefetchScalarGridSpec(
            num_scalar_prefetch=0,
            grid=(n_split, B, half),
            in_specs=[
                pl.BlockSpec((1, C, ts, _LANE), x_map),
                pl.BlockSpec((1, ts, _LANE), t_map),
            ],
            out_specs=[
                pl.BlockSpec((1, 1, 3, C, _SUB, _LANE),
                             lambda cc, b, i: (cc, b, 0, 0, 0, 0)),
                pl.BlockSpec((1, 1, 2, _SUB, _LANE),
                             lambda cc, b, i: (cc, b, 0, 0, 0)),
            ],
        ),
        compiler_params=pltpu.CompilerParams(
            dimension_semantics=("parallel", "parallel", "arbitrary"),
            vmem_limit_bytes=vmem_limit),
    )(x, t)

    # tiny final combine in plain JAX (per-image / per-class partials)
    dsum = jnp.sum(dice_parts, axis=(0, -2, -1))          # (B, 3, C)
    inter, ssum, osum = dsum[:, 0], dsum[:, 1], dsum[:, 2]
    dice = (2.0 * inter + smooth) / (ssum + osum + smooth)
    loss_dice = 1.0 - jnp.mean(dice)

    fsums = jnp.sum(focal_parts, axis=(0, 1, -2, -1))     # (2,)
    fsum = float(alpha) * fsums[0]                        # alpha applied here
    vcnt = fsums[1]
    # no valid pixels -> torch returns mean of an all-zero focal map -> 0.0
    loss_focal = jnp.where(vcnt > 0.0, fsum / jnp.maximum(vcnt, 1.0), 0.0)

    return weight_focal * loss_focal + weight_dice * loss_dice


def ref_hybrid_loss(logits, targets, weight_focal=0.5, weight_dice=0.5,
                    alpha=0.25, gamma=2, smooth=1.0, ignore_index=255):
    # Pure-JAX reference mirroring the PyTorch module.
    C = logits.shape[1]
    valid = targets != ignore_index
    tc = jnp.clip(jnp.where(valid, targets, 0), 0, C - 1)
    onehot = jax.nn.one_hot(tc, C, axis=1)                       # (B,C,H,W)
    soft = jax.nn.softmax(logits.astype(jnp.float32), axis=1)
    onehot_m = onehot * valid[:, None].astype(jnp.float32)
    inter = jnp.sum(soft * onehot_m, axis=(2, 3))
    union = jnp.sum(soft, axis=(2, 3)) + jnp.sum(onehot_m, axis=(2, 3))
    dice = (2.0 * inter + smooth) / (union + smooth)
    loss_dice = 1.0 - dice.mean()

    logp = jax.nn.log_softmax(logits.astype(jnp.float32), axis=1)
    ce = -jnp.sum(logp * onehot, axis=1)                         # (B,H,W)
    ce = jnp.where(valid, ce, 0.0)
    pt = jnp.exp(-ce)
    focal = alpha * (1.0 - pt) ** gamma * ce
    vf = valid.astype(jnp.float32)
    loss_focal = jnp.where(vf.sum() > 0,
                           (focal * vf).sum() / jnp.maximum(vf.sum(), 1.0),
                           focal.mean())
    return weight_focal * loss_focal + weight_dice * loss_dice


if __name__ == "__main__":
    key = jax.random.PRNGKey(0)
    k1, k2, k3 = jax.random.split(key, 3)
    B, C, H, W = 2, 4, 16, 16

    logits = jax.random.normal(k1, (B, C, H, W), jnp.float32)
    labels = jax.random.randint(k2, (B, H, W), 0, C).astype(jnp.int32)
    ignore_mask = jax.random.uniform(k3, (B, H, W)) < 0.1
    targets = jnp.where(ignore_mask, 255, labels).astype(jnp.int32)

    out = jax.jit(hybrid_loss)(logits, targets)
    out = jax.block_until_ready(out)

    ref = ref_hybrid_loss(logits, targets)
    assert abs(float(out) - float(ref)) < 2e-4, (float(out), float(ref))
    print("KERNEL_OK")
</pallas_src>

<mosaic_0001>
module attributes {stable_mosaic.version = 11 : i64} {
  func.func @_hybrid_loss_kernel(%arg0: i32, %arg1: i32, %arg2: i32, %arg3: memref<1x4x8x128xf32, #tpu.memory_space<vmem>>, %arg4: memref<1x8x128xi32, #tpu.memory_space<vmem>>, %arg5: memref<1x1x3x4x8x128xf32, #tpu.memory_space<vmem>>, %arg6: memref<1x1x2x8x128xf32, #tpu.memory_space<vmem>>) attributes {dimension_semantics = [#tpu.dimension_semantics<parallel>, #tpu.dimension_semantics<parallel>, #tpu.dimension_semantics<arbitrary>], iteration_bounds = array<i64: 1, 2, 1>, scalar_prefetch = 0 : i64, scratch_operands = 0 : i64, tpu.core_type = #tpu.core_type<tc>, window_params = [{transform_indices = @transform_0, window_bounds = array<i64: 1, 4, 8, 128>}, {transform_indices = @transform_1, window_bounds = array<i64: 1, 8, 128>}, {transform_indices = @transform_2, window_bounds = array<i64: 1, 1, 3, 4, 8, 128>}, {transform_indices = @transform_3, window_bounds = array<i64: 1, 1, 2, 8, 128>}]} {
    %c1_i32 = arith.constant 1 : i32
    %0 = arith.muli %arg0, %c1_i32 : i32
    %1 = arith.addi %0, %arg2 : i32
    %c0_i32 = arith.constant 0 : i32
    %2 = arith.cmpi eq, %arg2, %c0_i32 : i32
    %3 = arith.extui %2 : i1 to i32
    %c0_i32_0 = arith.constant 0 : i32
    %4 = arith.cmpi ne, %3, %c0_i32_0 : i32
    scf.if %4 {
      %cst_211 = arith.constant 0.000000e+00 : f32
      %243 = vector.broadcast %cst_211 : f32 to vector<1x1x3x4x8x128xf32>
      %c0_212 = arith.constant 0 : index
      %c0_213 = arith.constant 0 : index
      %c0_214 = arith.constant 0 : index
      %c0_215 = arith.constant 0 : index
      %c0_216 = arith.constant 0 : index
      %c0_217 = arith.constant 0 : index
      %244 = vector.load %arg5[%c0_212, %c0_213, %c0_214, %c0_215, %c0_216, %c0_217] : memref<1x1x3x4x8x128xf32, #tpu.memory_space<vmem>>, vector<1x1x3x4x8x128xf32>
      tpu.vector_store %arg5[%c0_212, %c0_213, %c0_214, %c0_215, %c0_216, %c0_217], %243 {strides = array<i32>} : memref<1x1x3x4x8x128xf32, #tpu.memory_space<vmem>>, vector<1x1x3x4x8x128xf32>,
      %cst_218 = arith.constant 0.000000e+00 : f32
      %245 = vector.broadcast %cst_218 : f32 to vector<1x1x2x8x128xf32>
      %c0_219 = arith.constant 0 : index
      %c0_220 = arith.constant 0 : index
      %c0_221 = arith.constant 0 : index
      %c0_222 = arith.constant 0 : index
      %c0_223 = arith.constant 0 : index
      %246 = vector.load %arg6[%c0_219, %c0_220, %c0_221, %c0_222, %c0_223] : memref<1x1x2x8x128xf32, #tpu.memory_space<vmem>>, vector<1x1x2x8x128xf32>
      tpu.vector_store %arg6[%c0_219, %c0_220, %c0_221, %c0_222, %c0_223], %245 {strides = array<i32>} : memref<1x1x2x8x128xf32, #tpu.memory_space<vmem>>, vector<1x1x2x8x128xf32>,
    } else {
    }
    %5 = tpu.iota {dimensions = array<i32: 0>} : vector<8x128xi32>
    %6 = tpu.iota {dimensions = array<i32: 1>} : vector<8x128xi32>
    %c8_i32 = arith.constant 8 : i32
    %7 = arith.muli %1, %c8_i32 : i32
    %cst = arith.constant 0.000000e+00 : f32
    %8 = vector.broadcast %cst : f32 to vector<8x128xf32>
    %c0_i32_1 = arith.constant 0 : i32
    %c8_i32_2 = arith.constant 8 : i32
    %9 = arith.muli %c0_i32_1, %c8_i32_2 : i32
    %10 = tpu.assume_multiple %9, 8 : i32
    %c0 = arith.constant 0 : index
    %11 = arith.index_cast %10 : i32 to index
    %c0_3 = arith.constant 0 : index
    %12 = vector.load %arg4[%c0, %11, %c0_3] : memref<1x8x128xi32, #tpu.memory_space<vmem>>, vector<1x8x128xi32>
    %13 = vector.shape_cast %12 : vector<1x8x128xi32> to vector<8x128xi32>
    %c255_i32 = arith.constant 255 : i32
    %14 = vector.broadcast %c255_i32 : i32 to vector<8x128xi32>
    %15 = arith.cmpi ne, %13, %14 : vector<8x128xi32>
    %16 = arith.addi %7, %10 : i32
    %17 = vector.broadcast %16 : i32 to vector<8x128xi32>
    %18 = arith.addi %17, %5 : vector<8x128xi32>
    %c128_i32 = arith.constant 128 : i32
    %19 = vector.broadcast %c128_i32 : i32 to vector<8x128xi32>
    %20 = arith.muli %18, %19 : vector<8x128xi32>
    %21 = arith.addi %20, %6 : vector<8x128xi32>
    %c256_i32 = arith.constant 256 : i32
    %22 = vector.broadcast %c256_i32 : i32 to vector<8x128xi32>
    %23 = arith.cmpi slt, %21, %22 : vector<8x128xi32>
    %24 = arith.extui %23 : vector<8x128xi1> to vector<8x128xi32>
    %25 = arith.sitofp %24 : vector<8x128xi32> to vector<8x128xf32>
    %26 = arith.andi %15, %23 : vector<8x128xi1>
    %27 = arith.extui %26 : vector<8x128xi1> to vector<8x128xi32>
    %28 = arith.sitofp %27 : vector<8x128xi32> to vector<8x128xf32>
    %c0_i32_4 = arith.constant 0 : i32
    %29 = vector.broadcast %c0_i32_4 : i32 to vector<8x128xi32>
    %30 = arith.select %26, %13, %29 : vector<8x128xi1>, vector<8x128xi32>
    %c0_i32_5 = arith.constant 0 : i32
    %c3_i32 = arith.constant 3 : i32
    %31 = vector.broadcast %c0_i32_5 : i32 to vector<8x128xi32>
    %32 = arith.maxsi %31, %30 : vector<8x128xi32>
    %33 = vector.broadcast %c3_i32 : i32 to vector<8x128xi32>
    %34 = arith.minsi %33, %32 : vector<8x128xi32>
    %c0_6 = arith.constant 0 : index
    %c0_7 = arith.constant 0 : index
    %35 = arith.index_cast %10 : i32 to index
    %c0_8 = arith.constant 0 : index
    %36 = vector.load %arg3[%c0_6, %c0_7, %35, %c0_8] : memref<1x4x8x128xf32, #tpu.memory_space<vmem>>, vector<1x1x8x128xf32>
    %37 = vector.shape_cast %36 : vector<1x1x8x128xf32> to vector<8x128xf32>
    %c0_9 = arith.constant 0 : index
    %c1 = arith.constant 1 : index
    %38 = arith.index_cast %10 : i32 to index
    %c0_10 = arith.constant 0 : index
    %39 = vector.load %arg3[%c0_9, %c1, %38, %c0_10] : memref<1x4x8x128xf32, #tpu.memory_space<vmem>>, vector<1x1x8x128xf32>
    %40 = vector.shape_cast %39 : vector<1x1x8x128xf32> to vector<8x128xf32>
    %41 = arith.maximumf %37, %40 : vector<8x128xf32>
    %c0_11 = arith.constant 0 : index
    %c2 = arith.constant 2 : index
    %42 = arith.index_cast %10 : i32 to index
    %c0_12 = arith.constant 0 : index
    %43 = vector.load %arg3[%c0_11, %c2, %42, %c0_12] : memref<1x4x8x128xf32, #tpu.memory_space<vmem>>, vector<1x1x8x128xf32>
    %44 = vector.shape_cast %43 : vector<1x1x8x128xf32> to vector<8x128xf32>
    %45 = arith.maximumf %41, %44 : vector<8x128xf32>
    %c0_13 = arith.constant 0 : index
    %c3 = arith.constant 3 : index
    %46 = arith.index_cast %10 : i32 to index
    %c0_14 = arith.constant 0 : index
    %47 = vector.load %arg3[%c0_13, %c3, %46, %c0_14] : memref<1x4x8x128xf32, #tpu.memory_space<vmem>>, vector<1x1x8x128xf32>
    %48 = vector.shape_cast %47 : vector<1x1x8x128xf32> to vector<8x128xf32>
    %49 = arith.maximumf %45, %48 : vector<8x128xf32>
    %cst_15 = arith.constant 0.000000e+00 : f32
    %50 = vector.broadcast %cst_15 : f32 to vector<8x128xf32>
    %51 = arith.select %23, %49, %50 : vector<8x128xi1>, vector<8x128xf32>
    %cst_16 = arith.constant 0.000000e+00 : f32
    %52 = vector.broadcast %cst_16 : f32 to vector<8x128xf32>
    %cst_17 = arith.constant 0.000000e+00 : f32
    %53 = vector.broadcast %cst_17 : f32 to vector<8x128xf32>
    %c0_18 = arith.constant 0 : index
    %c0_19 = arith.constant 0 : index
    %54 = arith.index_cast %10 : i32 to index
    %c0_20 = arith.constant 0 : index
    %55 = vector.load %arg3[%c0_18, %c0_19, %54, %c0_20] : memref<1x4x8x128xf32, #tpu.memory_space<vmem>>, vector<1x1x8x128xf32>
    %56 = vector.shape_cast %55 : vector<1x1x8x128xf32> to vector<8x128xf32>
    %cst_21 = arith.constant 0.000000e+00 : f32
    %57 = vector.broadcast %cst_21 : f32 to vector<8x128xf32>
    %58 = arith.select %23, %56, %57 : vector<8x128xi1>, vector<8x128xf32>
    %59 = arith.subf %58, %51 : vector<8x128xf32>
    %60 = math.exp %59 : vector<8x128xf32>
    %61 = arith.addf %52, %60 : vector<8x128xf32>
    %c0_i32_22 = arith.constant 0 : i32
    %62 = vector.broadcast %c0_i32_22 : i32 to vector<8x128xi32>
    %63 = arith.cmpi eq, %34, %62 : vector<8x128xi32>
    %64 = arith.select %63, %60, %53 : vector<8x128xi1>, vector<8x128xf32>
    %c0_23 = arith.constant 0 : index
    %c1_24 = arith.constant 1 : index
    %65 = arith.index_cast %10 : i32 to index
    %c0_25 = arith.constant 0 : index
    %66 = vector.load %arg3[%c0_23, %c1_24, %65, %c0_25] : memref<1x4x8x128xf32, #tpu.memory_space<vmem>>, vector<1x1x8x128xf32>
    %67 = vector.shape_cast %66 : vector<1x1x8x128xf32> to vector<8x128xf32>
    %cst_26 = arith.constant 0.000000e+00 : f32
    %68 = vector.broadcast %cst_26 : f32 to vector<8x128xf32>
    %69 = arith.select %23, %67, %68 : vector<8x128xi1>, vector<8x128xf32>
    %70 = arith.subf %69, %51 : vector<8x128xf32>
    %71 = math.exp %70 : vector<8x128xf32>
    %72 = arith.addf %61, %71 : vector<8x128xf32>
    %c1_i32_27 = arith.constant 1 : i32
    %73 = vector.broadcast %c1_i32_27 : i32 to vector<8x128xi32>
    %74 = arith.cmpi eq, %34, %73 : vector<8x128xi32>
    %75 = arith.select %74, %71, %64 : vector<8x128xi1>, vector<8x128xf32>
    %c0_28 = arith.constant 0 : index
    %c2_29 = arith.constant 2 : index
    %76 = arith.index_cast %10 : i32 to index
    %c0_30 = arith.constant 0 : index
    %77 = vector.load %arg3[%c0_28, %c2_29, %76, %c0_30] : memref<1x4x8x128xf32, #tpu.memory_space<vmem>>, vector<1x1x8x128xf32>
    %78 = vector.shape_cast %77 : vector<1x1x8x128xf32> to vector<8x128xf32>
    %cst_31 = arith.constant 0.000000e+00 : f32
    %79 = vector.broadcast %cst_31 : f32 to vector<8x128xf32>
    %80 = arith.select %23, %78, %79 : vector<8x128xi1>, vector<8x128xf32>
    %81 = arith.subf %80, %51 : vector<8x128xf32>
    %82 = math.exp %81 : vector<8x128xf32>
    %83 = arith.addf %72, %82 : vector<8x128xf32>
    %c2_i32 = arith.constant 2 : i32
    %84 = vector.broadcast %c2_i32 : i32 to vector<8x128xi32>
    %85 = arith.cmpi eq, %34, %84 : vector<8x128xi32>
    %86 = arith.select %85, %82, %75 : vector<8x128xi1>, vector<8x128xf32>
    %c0_32 = arith.constant 0 : index
    %c3_33 = arith.constant 3 : index
    %87 = arith.index_cast %10 : i32 to index
    %c0_34 = arith.constant 0 : index
    %88 = vector.load %arg3[%c0_32, %c3_33, %87, %c0_34] : memref<1x4x8x128xf32, #tpu.memory_space<vmem>>, vector<1x1x8x128xf32>
    %89 = vector.shape_cast %88 : vector<1x1x8x128xf32> to vector<8x128xf32>
    %cst_35 = arith.constant 0.000000e+00 : f32
    %90 = vector.broadcast %cst_35 : f32 to vector<8x128xf32>
    %91 = arith.select %23, %89, %90 : vector<8x128xi1>, vector<8x128xf32>
    %92 = arith.subf %91, %51 : vector<8x128xf32>
    %93 = math.exp %92 : vector<8x128xf32>
    %94 = arith.addf %83, %93 : vector<8x128xf32>
    %c3_i32_36 = arith.constant 3 : i32
    %95 = vector.broadcast %c3_i32_36 : i32 to vector<8x128xi32>
    %96 = arith.cmpi eq, %34, %95 : vector<8x128xi32>
    %97 = arith.select %96, %93, %86 : vector<8x128xi1>, vector<8x128xf32>
    %98 = tpu.reciprocal %94 {approx = true} : vector<8x128xf32> -> vector<8x128xf32>
    %99 = arith.mulf %94, %98 : vector<8x128xf32>
    %cst_37 = arith.constant 2.000000e+00 : f32
    %100 = vector.broadcast %cst_37 : f32 to vector<8x128xf32>
    %101 = arith.subf %100, %99 : vector<8x128xf32>
    %102 = arith.mulf %98, %101 : vector<8x128xf32>
    %103 = arith.mulf %97, %102 : vector<8x128xf32>
    %cst_38 = arith.constant 9.99999935E-39 : f32
    %104 = vector.broadcast %cst_38 : f32 to vector<8x128xf32>
    %105 = arith.maximumf %103, %104 : vector<8x128xf32>
    %106 = math.log %105 : vector<8x128xf32>
    %cst_39 = arith.constant 0.000000e+00 : f32
    %107 = vector.broadcast %cst_39 : f32 to vector<8x128xf32>
    %108 = arith.subf %107, %106 : vector<8x128xf32>
    %109 = arith.mulf %108, %28 : vector<8x128xf32>
    %cst_40 = arith.constant 1.000000e+00 : f32
    %110 = vector.broadcast %cst_40 : f32 to vector<8x128xf32>
    %111 = arith.subf %110, %103 : vector<8x128xf32>
    %cst_41 = arith.constant 0.000000e+00 : f32
    %112 = vector.broadcast %cst_41 : f32 to vector<8x128xf32>
    %113 = arith.maximumf %111, %112 : vector<8x128xf32>
    %114 = arith.mulf %113, %113 : vector<8x128xf32>
    %115 = arith.mulf %114, %109 : vector<8x128xf32>
    %116 = arith.mulf %102, %25 : vector<8x128xf32>
    %117 = arith.mulf %60, %116 : vector<8x128xf32>
    %c0_i32_42 = arith.constant 0 : i32
    %118 = vector.broadcast %c0_i32_42 : i32 to vector<8x128xi32>
    %119 = arith.cmpi eq, %34, %118 : vector<8x128xi32>
    %120 = arith.extui %119 : vector<8x128xi1> to vector<8x128xi32>
    %121 = arith.sitofp %120 : vector<8x128xi32> to vector<8x128xf32>
    %122 = arith.mulf %121, %28 : vector<8x128xf32>
    %123 = arith.mulf %117, %122 : vector<8x128xf32>
    %124 = arith.addf %8, %123 : vector<8x128xf32>
    %125 = arith.addf %8, %117 : vector<8x128xf32>
    %126 = arith.addf %8, %122 : vector<8x128xf32>
    %127 = arith.mulf %71, %116 : vector<8x128xf32>
    %c1_i32_43 = arith.constant 1 : i32
    %128 = vector.broadcast %c1_i32_43 : i32 to vector<8x128xi32>
    %129 = arith.cmpi eq, %34, %128 : vector<8x128xi32>
    %130 = arith.extui %129 : vector<8x128xi1> to vector<8x128xi32>
    %131 = arith.sitofp %130 : vector<8x128xi32> to vector<8x128xf32>
    %132 = arith.mulf %131, %28 : vector<8x128xf32>
    %133 = arith.mulf %127, %132 : vector<8x128xf32>
    %134 = arith.addf %8, %133 : vector<8x128xf32>
    %135 = arith.addf %8, %127 : vector<8x128xf32>
    %136 = arith.addf %8, %132 : vector<8x128xf32>
    %137 = arith.mulf %82, %116 : vector<8x128xf32>
    %c2_i32_44 = arith.constant 2 : i32
    %138 = vector.broadcast %c2_i32_44 : i32 to vector<8x128xi32>
    %139 = arith.cmpi eq, %34, %138 : vector<8x128xi32>
    %140 = arith.extui %139 : vector<8x128xi1> to vector<8x128xi32>
    %141 = arith.sitofp %140 : vector<8x128xi32> to vector<8x128xf32>
    %142 = arith.mulf %141, %28 : vector<8x128xf32>
    %143 = arith.mulf %137, %142 : vector<8x128xf32>
    %144 = arith.addf %8, %143 : vector<8x128xf32>
    %145 = arith.addf %8, %137 : vector<8x128xf32>
    %146 = arith.addf %8, %142 : vector<8x128xf32>
    %147 = arith.mulf %93, %116 : vector<8x128xf32>
    %c3_i32_45 = arith.constant 3 : i32
    %148 = vector.broadcast %c3_i32_45 : i32 to vector<8x128xi32>
    %149 = arith.cmpi eq, %34, %148 : vector<8x128xi32>
    %150 = arith.extui %149 : vector<8x128xi1> to vector<8x128xi32>
    %151 = arith.sitofp %150 : vector<8x128xi32> to vector<8x128xf32>
    %152 = arith.mulf %151, %28 : vector<8x128xf32>
    %153 = arith.mulf %147, %152 : vector<8x128xf32>
    %154 = arith.addf %8, %153 : vector<8x128xf32>
    %155 = arith.addf %8, %147 : vector<8x128xf32>
    %156 = arith.addf %8, %152 : vector<8x128xf32>
    %157 = arith.addf %8, %115 : vector<8x128xf32>
    %158 = arith.addf %8, %28 : vector<8x128xf32>
    %c1_i32_46 = arith.constant 1 : i32
    %c0_47 = arith.constant 0 : index
    %c0_48 = arith.constant 0 : index
    %c0_49 = arith.constant 0 : index
    %c0_50 = arith.constant 0 : index
    %c0_51 = arith.constant 0 : index
    %159 = vector.load %arg6[%c0_47, %c0_48, %c0_49, %c0_50, %c0_51] : memref<1x1x2x8x128xf32, #tpu.memory_space<vmem>>, vector<1x1x1x8x128xf32>
    %160 = vector.shape_cast %159 : vector<1x1x1x8x128xf32> to vector<8x128xf32>
    %161 = arith.addf %160, %157 : vector<8x128xf32>
    %c0_52 = arith.constant 0 : index
    %c0_53 = arith.constant 0 : index
    %c0_54 = arith.constant 0 : index
    %c0_55 = arith.constant 0 : index
    %c0_56 = arith.constant 0 : index
    %162 = vector.load %arg6[%c0_52, %c0_53, %c0_54, %c0_55, %c0_56] : memref<1x1x2x8x128xf32, #tpu.memory_space<vmem>>, vector<1x1x1x8x128xf32>
    %163 = vector.shape_cast %162 : vector<1x1x1x8x128xf32> to vector<8x128xf32>
    %164 = vector.shape_cast %161 : vector<8x128xf32> to vector<1x1x1x8x128xf32>
    tpu.vector_store %arg6[%c0_52, %c0_53, %c0_54, %c0_55, %c0_56], %164 {strides = array<i32>} : memref<1x1x2x8x128xf32, #tpu.memory_space<vmem>>, vector<1x1x1x8x128xf32>,
    %c0_57 = arith.constant 0 : index
    %c0_58 = arith.constant 0 : index
    %c1_59 = arith.constant 1 : index
    %c0_60 = arith.constant 0 : index
    %c0_61 = arith.constant 0 : index
    %165 = vector.load %arg6[%c0_57, %c0_58, %c1_59, %c0_60, %c0_61] : memref<1x1x2x8x128xf32, #tpu.memory_space<vmem>>, vector<1x1x1x8x128xf32>
    %166 = vector.shape_cast %165 : vector<1x1x1x8x128xf32> to vector<8x128xf32>
    %167 = arith.addf %166, %158 : vector<8x128xf32>
    %c0_62 = arith.constant 0 : index
    %c0_63 = arith.constant 0 : index
    %c1_64 = arith.constant 1 : index
    %c0_65 = arith.constant 0 : index
    %c0_66 = arith.constant 0 : index
    %168 = vector.load %arg6[%c0_62, %c0_63, %c1_64, %c0_65, %c0_66] : memref<1x1x2x8x128xf32, #tpu.memory_space<vmem>>, vector<1x1x1x8x128xf32>
    %169 = vector.shape_cast %168 : vector<1x1x1x8x128xf32> to vector<8x128xf32>
    %170 = vector.shape_cast %167 : vector<8x128xf32> to vector<1x1x1x8x128xf32>
    tpu.vector_store %arg6[%c0_62, %c0_63, %c1_64, %c0_65, %c0_66], %170 {strides = array<i32>} : memref<1x1x2x8x128xf32, #tpu.memory_space<vmem>>, vector<1x1x1x8x128xf32>,
    %c0_67 = arith.constant 0 : index
    %c0_68 = arith.constant 0 : index
    %c0_69 = arith.constant 0 : index
    %c0_70 = arith.constant 0 : index
    %c0_71 = arith.constant 0 : index
    %c0_72 = arith.constant 0 : index
    %171 = vector.load %arg5[%c0_67, %c0_68, %c0_69, %c0_70, %c0_71, %c0_72] : memref<1x1x3x4x8x128xf32, #tpu.memory_space<vmem>>, vector<1x1x1x1x8x128xf32>
    %172 = vector.shape_cast %171 : vector<1x1x1x1x8x128xf32> to vector<8x128xf32>
    %173 = arith.addf %172, %124 : vector<8x128xf32>
    %c0_73 = arith.constant 0 : index
    %c0_74 = arith.constant 0 : index
    %c0_75 = arith.constant 0 : index
    %c0_76 = arith.constant 0 : index
    %c0_77 = arith.constant 0 : index
    %c0_78 = arith.constant 0 : index
    %174 = vector.load %arg5[%c0_73, %c0_74, %c0_75, %c0_76, %c0_77, %c0_78] : memref<1x1x3x4x8x128xf32, #tpu.memory_space<vmem>>, vector<1x1x1x1x8x128xf32>
    %175 = vector.shape_cast %174 : vector<1x1x1x1x8x128xf32> to vector<8x128xf32>
    %176 = vector.shape_cast %173 : vector<8x128xf32> to vector<1x1x1x1x8x128xf32>
    tpu.vector_store %arg5[%c0_73, %c0_74, %c0_75, %c0_76, %c0_77, %c0_78], %176 {strides = array<i32>} : memref<1x1x3x4x8x128xf32, #tpu.memory_space<vmem>>, vector<1x1x1x1x8x128xf32>,
    %c0_79 = arith.constant 0 : index
    %c0_80 = arith.constant 0 : index
    %c1_81 = arith.constant 1 : index
    %c0_82 = arith.constant 0 : index
    %c0_83 = arith.constant 0 : index
    %c0_84 = arith.constant 0 : index
    %177 = vector.load %arg5[%c0_79, %c0_80, %c1_81, %c0_82, %c0_83, %c0_84] : memref<1x1x3x4x8x128xf32, #tpu.memory_space<vmem>>, vector<1x1x1x1x8x128xf32>
    %178 = vector.shape_cast %177 : vector<1x1x1x1x8x128xf32> to vector<8x128xf32>
    %179 = arith.addf %178, %125 : vector<8x128xf32>
    %c0_85 = arith.constant 0 : index
    %c0_86 = arith.constant 0 : index
    %c1_87 = arith.constant 1 : index
    %c0_88 = arith.constant 0 : index
    %c0_89 = arith.constant 0 : index
    %c0_90 = arith.constant 0 : index
    %180 = vector.load %arg5[%c0_85, %c0_86, %c1_87, %c0_88, %c0_89, %c0_90] : memref<1x1x3x4x8x128xf32, #tpu.memory_space<vmem>>, vector<1x1x1x1x8x128xf32>
    %181 = vector.shape_cast %180 : vector<1x1x1x1x8x128xf32> to vector<8x128xf32>
    %182 = vector.shape_cast %179 : vector<8x128xf32> to vector<1x1x1x1x8x128xf32>
    tpu.vector_store %arg5[%c0_85, %c0_86, %c1_87, %c0_88, %c0_89, %c0_90], %182 {strides = array<i32>} : memref<1x1x3x4x8x128xf32, #tpu.memory_space<vmem>>, vector<1x1x1x1x8x128xf32>,
    %c0_91 = arith.constant 0 : index
    %c0_92 = arith.constant 0 : index
    %c2_93 = arith.constant 2 : index
    %c0_94 = arith.constant 0 : index
    %c0_95 = arith.constant 0 : index
    %c0_96 = arith.constant 0 : index
    %183 = vector.load %arg5[%c0_91, %c0_92, %c2_93, %c0_94, %c0_95, %c0_96] : memref<1x1x3x4x8x128xf32, #tpu.memory_space<vmem>>, vector<1x1x1x1x8x128xf32>
    %184 = vector.shape_cast %183 : vector<1x1x1x1x8x128xf32> to vector<8x128xf32>
    %185 = arith.addf %184, %126 : vector<8x128xf32>
    %c0_97 = arith.constant 0 : index
    %c0_98 = arith.constant 0 : index
    %c2_99 = arith.constant 2 : index
    %c0_100 = arith.constant 0 : index
    %c0_101 = arith.constant 0 : index
    %c0_102 = arith.constant 0 : index
    %186 = vector.load %arg5[%c0_97, %c0_98, %c2_99, %c0_100, %c0_101, %c0_102] : memref<1x1x3x4x8x128xf32, #tpu.memory_space<vmem>>, vector<1x1x1x1x8x128xf32>
    %187 = vector.shape_cast %186 : vector<1x1x1x1x8x128xf32> to vector<8x128xf32>
    %188 = vector.shape_cast %185 : vector<8x128xf32> to vector<1x1x1x1x8x128xf32>
    tpu.vector_store %arg5[%c0_97, %c0_98, %c2_99, %c0_100, %c0_101, %c0_102], %188 {strides = array<i32>} : memref<1x1x3x4x8x128xf32, #tpu.memory_space<vmem>>, vector<1x1x1x1x8x128xf32>,
    %c0_103 = arith.constant 0 : index
    %c0_104 = arith.constant 0 : index
    %c0_105 = arith.constant 0 : index
    %c1_106 = arith.constant 1 : index
    %c0_107 = arith.constant 0 : index
    %c0_108 = arith.constant 0 : index
    %189 = vector.load %arg5[%c0_103, %c0_104, %c0_105, %c1_106, %c0_107, %c0_108] : memref<1x1x3x4x8x128xf32, #tpu.memory_space<vmem>>, vector<1x1x1x1x8x128xf32>
    %190 = vector.shape_cast %189 : vector<1x1x1x1x8x128xf32> to vector<8x128xf32>
    %191 = arith.addf %190, %134 : vector<8x128xf32>
    %c0_109 = arith.constant 0 : index
    %c0_110 = arith.constant 0 : index
    %c0_111 = arith.constant 0 : index
    %c1_112 = arith.constant 1 : index
    %c0_113 = arith.constant 0 : index
    %c0_114 = arith.constant 0 : index
    %192 = vector.load %arg5[%c0_109, %c0_110, %c0_111, %c1_112, %c0_113, %c0_114] : memref<1x1x3x4x8x128xf32, #tpu.memory_space<vmem>>, vector<1x1x1x1x8x128xf32>
    %193 = vector.shape_cast %192 : vector<1x1x1x1x8x128xf32> to vector<8x128xf32>
    %194 = vector.shape_cast %191 : vector<8x128xf32> to vector<1x1x1x1x8x128xf32>
    tpu.vector_store %arg5[%c0_109, %c0_110, %c0_111, %c1_112, %c0_113, %c0_114], %194 {strides = array<i32>} : memref<1x1x3x4x8x128xf32, #tpu.memory_space<vmem>>, vector<1x1x1x1x8x128xf32>,
    %c0_115 = arith.constant 0 : index
    %c0_116 = arith.constant 0 : index
    %c1_117 = arith.constant 1 : index
    %c1_118 = arith.constant 1 : index
    %c0_119 = arith.constant 0 : index
    %c0_120 = arith.constant 0 : index
    %195 = vector.load %arg5[%c0_115, %c0_116, %c1_117, %c1_118, %c0_119, %c0_120] : memref<1x1x3x4x8x128xf32, #tpu.memory_space<vmem>>, vector<1x1x1x1x8x128xf32>
    %196 = vector.shape_cast %195 : vector<1x1x1x1x8x128xf32> to vector<8x128xf32>
    %197 = arith.addf %196, %135 : vector<8x128xf32>
    %c0_121 = arith.constant 0 : index
    %c0_122 = arith.constant 0 : index
    %c1_123 = arith.constant 1 : index
    %c1_124 = arith.constant 1 : index
    %c0_125 = arith.constant 0 : index
    %c0_126 = arith.constant 0 : index
    %198 = vector.load %arg5[%c0_121, %c0_122, %c1_123, %c1_124, %c0_125, %c0_126] : memref<1x1x3x4x8x128xf32, #tpu.memory_space<vmem>>, vector<1x1x1x1x8x128xf32>
    %199 = vector.shape_cast %198 : vector<1x1x1x1x8x128xf32> to vector<8x128xf32>
    %200 = vector.shape_cast %197 : vector<8x128xf32> to vector<1x1x1x1x8x128xf32>
    tpu.vector_store %arg5[%c0_121, %c0_122, %c1_123, %c1_124, %c0_125, %c0_126], %200 {strides = array<i32>} : memref<1x1x3x4x8x128xf32, #tpu.memory_space<vmem>>, vector<1x1x1x1x8x128xf32>,
    %c0_127 = arith.constant 0 : index
    %c0_128 = arith.constant 0 : index
    %c2_129 = arith.constant 2 : index
    %c1_130 = arith.constant 1 : index
    %c0_131 = arith.constant 0 : index
    %c0_132 = arith.constant 0 : index
    %201 = vector.load %arg5[%c0_127, %c0_128, %c2_129, %c1_130, %c0_131, %c0_132] : memref<1x1x3x4x8x128xf32, #tpu.memory_space<vmem>>, vector<1x1x1x1x8x128xf32>
    %202 = vector.shape_cast %201 : vector<1x1x1x1x8x128xf32> to vector<8x128xf32>
    %203 = arith.addf %202, %136 : vector<8x128xf32>
    %c0_133 = arith.constant 0 : index
    %c0_134 = arith.constant 0 : index
    %c2_135 = arith.constant 2 : index
    %c1_136 = arith.constant 1 : index
    %c0_137 = arith.constant 0 : index
    %c0_138 = arith.constant 0 : index
    %204 = vector.load %arg5[%c0_133, %c0_134, %c2_135, %c1_136, %c0_137, %c0_138] : memref<1x1x3x4x8x128xf32, #tpu.memory_space<vmem>>, vector<1x1x1x1x8x128xf32>
    %205 = vector.shape_cast %204 : vector<1x1x1x1x8x128xf32> to vector<8x128xf32>
    %206 = vector.shape_cast %203 : vector<8x128xf32> to vector<1x1x1x1x8x128xf32>
    tpu.vector_store %arg5[%c0_133, %c0_134, %c2_135, %c1_136, %c0_137, %c0_138], %206 {strides = array<i32>} : memref<1x1x3x4x8x128xf32, #tpu.memory_space<vmem>>, vector<1x1x1x1x8x128xf32>,
    %c0_139 = arith.constant 0 : index
    %c0_140 = arith.constant 0 : index
    %c0_141 = arith.constant 0 : index
    %c2_142 = arith.constant 2 : index
    %c0_143 = arith.constant 0 : index
    %c0_144 = arith.constant 0 : index
    %207 = vector.load %arg5[%c0_139, %c0_140, %c0_141, %c2_142, %c0_143, %c0_144] : memref<1x1x3x4x8x128xf32, #tpu.memory_space<vmem>>, vector<1x1x1x1x8x128xf32>
    %208 = vector.shape_cast %207 : vector<1x1x1x1x8x128xf32> to vector<8x128xf32>
    %209 = arith.addf %208, %144 : vector<8x128xf32>
    %c0_145 = arith.constant 0 : index
    %c0_146 = arith.constant 0 : index
    %c0_147 = arith.constant 0 : index
    %c2_148 = arith.constant 2 : index
    %c0_149 = arith.constant 0 : index
    %c0_150 = arith.constant 0 : index
    %210 = vector.load %arg5[%c0_145, %c0_146, %c0_147, %c2_148, %c0_149, %c0_150] : memref<1x1x3x4x8x128xf32, #tpu.memory_space<vmem>>, vector<1x1x1x1x8x128xf32>
    %211 = vector.shape_cast %210 : vector<1x1x1x1x8x128xf32> to vector<8x128xf32>
    %212 = vector.shape_cast %209 : vector<8x128xf32> to vector<1x1x1x1x8x128xf32>
    tpu.vector_store %arg5[%c0_145, %c0_146, %c0_147, %c2_148, %c0_149, %c0_150], %212 {strides = array<i32>} : memref<1x1x3x4x8x128xf32, #tpu.memory_space<vmem>>, vector<1x1x1x1x8x128xf32>,
    %c0_151 = arith.constant 0 : index
    %c0_152 = arith.constant 0 : index
    %c1_153 = arith.constant 1 : index
    %c2_154 = arith.constant 2 : index
    %c0_155 = arith.constant 0 : index
    %c0_156 = arith.constant 0 : index
    %213 = vector.load %arg5[%c0_151, %c0_152, %c1_153, %c2_154, %c0_155, %c0_156] : memref<1x1x3x4x8x128xf32, #tpu.memory_space<vmem>>, vector<1x1x1x1x8x128xf32>
    %214 = vector.shape_cast %213 : vector<1x1x1x1x8x128xf32> to vector<8x128xf32>
    %215 = arith.addf %214, %145 : vector<8x128xf32>
    %c0_157 = arith.constant 0 : index
    %c0_158 = arith.constant 0 : index
    %c1_159 = arith.constant 1 : index
    %c2_160 = arith.constant 2 : index
    %c0_161 = arith.constant 0 : index
    %c0_162 = arith.constant 0 : index
    %216 = vector.load %arg5[%c0_157, %c0_158, %c1_159, %c2_160, %c0_161, %c0_162] : memref<1x1x3x4x8x128xf32, #tpu.memory_space<vmem>>, vector<1x1x1x1x8x128xf32>
    %217 = vector.shape_cast %216 : vector<1x1x1x1x8x128xf32> to vector<8x128xf32>
    %218 = vector.shape_cast %215 : vector<8x128xf32> to vector<1x1x1x1x8x128xf32>
    tpu.vector_store %arg5[%c0_157, %c0_158, %c1_159, %c2_160, %c0_161, %c0_162], %218 {strides = array<i32>} : memref<1x1x3x4x8x128xf32, #tpu.memory_space<vmem>>, vector<1x1x1x1x8x128xf32>,
    %c0_163 = arith.constant 0 : index
    %c0_164 = arith.constant 0 : index
    %c2_165 = arith.constant 2 : index
    %c2_166 = arith.constant 2 : index
    %c0_167 = arith.constant 0 : index
    %c0_168 = arith.constant 0 : index
    %219 = vector.load %arg5[%c0_163, %c0_164, %c2_165, %c2_166, %c0_167, %c0_168] : memref<1x1x3x4x8x128xf32, #tpu.memory_space<vmem>>, vector<1x1x1x1x8x128xf32>
    %220 = vector.shape_cast %219 : vector<1x1x1x1x8x128xf32> to vector<8x128xf32>
    %221 = arith.addf %220, %146 : vector<8x128xf32>
    %c0_169 = arith.constant 0 : index
    %c0_170 = arith.constant 0 : index
    %c2_171 = arith.constant 2 : index
    %c2_172 = arith.constant 2 : index
    %c0_173 = arith.constant 0 : index
    %c0_174 = arith.constant 0 : index
    %222 = vector.load %arg5[%c0_169, %c0_170, %c2_171, %c2_172, %c0_173, %c0_174] : memref<1x1x3x4x8x128xf32, #tpu.memory_space<vmem>>, vector<1x1x1x1x8x128xf32>
    %223 = vector.shape_cast %222 : vector<1x1x1x1x8x128xf32> to vector<8x128xf32>
    %224 = vector.shape_cast %221 : vector<8x128xf32> to vector<1x1x1x1x8x128xf32>
    tpu.vector_store %arg5[%c0_169, %c0_170, %c2_171, %c2_172, %c0_173, %c0_174], %224 {strides = array<i32>} : memref<1x1x3x4x8x128xf32, #tpu.memory_space<vmem>>, vector<1x1x1x1x8x128xf32>,
    %c0_175 = arith.constant 0 : index
    %c0_176 = arith.constant 0 : index
    %c0_177 = arith.constant 0 : index
    %c3_178 = arith.constant 3 : index
    %c0_179 = arith.constant 0 : index
    %c0_180 = arith.constant 0 : index
    %225 = vector.load %arg5[%c0_175, %c0_176, %c0_177, %c3_178, %c0_179, %c0_180] : memref<1x1x3x4x8x128xf32, #tpu.memory_space<vmem>>, vector<1x1x1x1x8x128xf32>
    %226 = vector.shape_cast %225 : vector<1x1x1x1x8x128xf32> to vector<8x128xf32>
    %227 = arith.addf %226, %154 : vector<8x128xf32>
    %c0_181 = arith.constant 0 : index
    %c0_182 = arith.constant 0 : index
    %c0_183 = arith.constant 0 : index
    %c3_184 = arith.constant 3 : index
    %c0_185 = arith.constant 0 : index
    %c0_186 = arith.constant 0 : index
    %228 = vector.load %arg5[%c0_181, %c0_182, %c0_183, %c3_184, %c0_185, %c0_186] : memref<1x1x3x4x8x128xf32, #tpu.memory_space<vmem>>, vector<1x1x1x1x8x128xf32>
    %229 = vector.shape_cast %228 : vector<1x1x1x1x8x128xf32> to vector<8x128xf32>
    %230 = vector.shape_cast %227 : vector<8x128xf32> to vector<1x1x1x1x8x128xf32>
    tpu.vector_store %arg5[%c0_181, %c0_182, %c0_183, %c3_184, %c0_185, %c0_186], %230 {strides = array<i32>} : memref<1x1x3x4x8x128xf32, #tpu.memory_space<vmem>>, vector<1x1x1x1x8x128xf32>,
    %c0_187 = arith.constant 0 : index
    %c0_188 = arith.constant 0 : index
    %c1_189 = arith.constant 1 : index
    %c3_190 = arith.constant 3 : index
    %c0_191 = arith.constant 0 : index
    %c0_192 = arith.constant 0 : index
    %231 = vector.load %arg5[%c0_187, %c0_188, %c1_189, %c3_190, %c0_191, %c0_192] : memref<1x1x3x4x8x128xf32, #tpu.memory_space<vmem>>, vector<1x1x1x1x8x128xf32>
    %232 = vector.shape_cast %231 : vector<1x1x1x1x8x128xf32> to vector<8x128xf32>
    %233 = arith.addf %232, %155 : vector<8x128xf32>
    %c0_193 = arith.constant 0 : index
    %c0_194 = arith.constant 0 : index
    %c1_195 = arith.constant 1 : index
    %c3_196 = arith.constant 3 : index
    %c0_197 = arith.constant 0 : index
    %c0_198 = arith.constant 0 : index
    %234 = vector.load %arg5[%c0_193, %c0_194, %c1_195, %c3_196, %c0_197, %c0_198] : memref<1x1x3x4x8x128xf32, #tpu.memory_space<vmem>>, vector<1x1x1x1x8x128xf32>
    %235 = vector.shape_cast %234 : vector<1x1x1x1x8x128xf32> to vector<8x128xf32>
    %236 = vector.shape_cast %233 : vector<8x128xf32> to vector<1x1x1x1x8x128xf32>
    tpu.vector_store %arg5[%c0_193, %c0_194, %c1_195, %c3_196, %c0_197, %c0_198], %236 {strides = array<i32>} : memref<1x1x3x4x8x128xf32, #tpu.memory_space<vmem>>, vector<1x1x1x1x8x128xf32>,
    %c0_199 = arith.constant 0 : index
    %c0_200 = arith.constant 0 : index
    %c2_201 = arith.constant 2 : index
    %c3_202 = arith.constant 3 : index
    %c0_203 = arith.constant 0 : index
    %c0_204 = arith.constant 0 : index
    %237 = vector.load %arg5[%c0_199, %c0_200, %c2_201, %c3_202, %c0_203, %c0_204] : memref<1x1x3x4x8x128xf32, #tpu.memory_space<vmem>>, vector<1x1x1x1x8x128xf32>
    %238 = vector.shape_cast %237 : vector<1x1x1x1x8x128xf32> to vector<8x128xf32>
    %239 = arith.addf %238, %156 : vector<8x128xf32>
    %c0_205 = arith.constant 0 : index
    %c0_206 = arith.constant 0 : index
    %c2_207 = arith.constant 2 : index
    %c3_208 = arith.constant 3 : index
    %c0_209 = arith.constant 0 : index
    %c0_210 = arith.constant 0 : index
    %240 = vector.load %arg5[%c0_205, %c0_206, %c2_207, %c3_208, %c0_209, %c0_210] : memref<1x1x3x4x8x128xf32, #tpu.memory_space<vmem>>, vector<1x1x1x1x8x128xf32>
    %241 = vector.shape_cast %240 : vector<1x1x1x1x8x128xf32> to vector<8x128xf32>
    %242 = vector.shape_cast %239 : vector<8x128xf32> to vector<1x1x1x1x8x128xf32>
    tpu.vector_store %arg5[%c0_205, %c0_206, %c2_207, %c3_208, %c0_209, %c0_210], %242 {strides = array<i32>} : memref<1x1x3x4x8x128xf32, #tpu.memory_space<vmem>>, vector<1x1x1x1x8x128xf32>,
    return
  }
  func.func @transform_0(%arg0: i32, %arg1: i32, %arg2: i32) -> (i32, i32, i32, i32) {
    %c1_i32 = arith.constant 1 : i32
    %0 = arith.muli %arg0, %c1_i32 : i32
    %1 = arith.addi %0, %arg2 : i32
    %c0_i32 = arith.constant 0 : i32
    %2 = arith.minsi %1, %c0_i32 : i32
    %c0_i32_0 = arith.constant 0 : i32
    %c0_i32_1 = arith.constant 0 : i32
    %c0_i32_2 = arith.constant 0 : i32
    return %arg1, %c0_i32_0, %2, %c0_i32_1 : i32, i32, i32, i32
  }
  func.func @transform_1(%arg0: i32, %arg1: i32, %arg2: i32) -> (i32, i32, i32) {
    %c1_i32 = arith.constant 1 : i32
    %0 = arith.muli %arg0, %c1_i32 : i32
    %1 = arith.addi %0, %arg2 : i32
    %c0_i32 = arith.constant 0 : i32
    %2 = arith.minsi %1, %c0_i32 : i32
    %c0_i32_0 = arith.constant 0 : i32
    %c0_i32_1 = arith.constant 0 : i32
    return %arg1, %2, %c0_i32_0 : i32, i32, i32
  }
  func.func @transform_2(%arg0: i32, %arg1: i32, %arg2: i32) -> (i32, i32, i32, i32, i32, i32) {
    %c0_i32 = arith.constant 0 : i32
    %c0_i32_0 = arith.constant 0 : i32
    %c0_i32_1 = arith.constant 0 : i32
    %c0_i32_2 = arith.constant 0 : i32
    %c0_i32_3 = arith.constant 0 : i32
    return %arg0, %arg1, %c0_i32, %c0_i32_0, %c0_i32_1, %c0_i32_2 : i32, i32, i32, i32, i32, i32
  }
  func.func @transform_3(%arg0: i32, %arg1: i32, %arg2: i32) -> (i32, i32, i32, i32, i32) {
    %c0_i32 = arith.constant 0 : i32
    %c0_i32_0 = arith.constant 0 : i32
    %c0_i32_1 = arith.constant 0 : i32
    %c0_i32_2 = arith.constant 0 : i32
    return %arg0, %arg1, %c0_i32, %c0_i32_0, %c0_i32_1 : i32, i32, i32, i32, i32
  }
}

</mosaic_0001>

<bundles_post_ra>
// kernel: hybrid_loss.1
= control target key start
LH: loop header
LB: loop body
LE: loop exit
PB: predicated region body
PF: predicated region fallthrough
CT: control target
= control target key end

     0   :  { %s785_s12 = smov 0   ;;  %s787_s13 = smov 0   ;;  %s881_s0 = inlined_call_operand.vmem [shape: f32[2,4,8,128], index: 0, kind: input, shape index: {}]   ;;  %s882_s1 = inlined_call_operand.vmem [shape: s32[2,8,128], index: 1, kind: input, shape index: {}]   ;;  %s883_s2 = inlined_call_operand.vmem [shape: f32[1,2,3,4,8,128], index: 2, kind: output, shape index: {0}]   ;;  %s884_s3 = inlined_call_operand.vmem [shape: f32[1,2,2,8,128], index: 3, kind: output, shape index: {1}]  }
   0x1   :  { %s789_s14 = smov 0  }
   0x2 LB: > { %s29_s15 = sadd.s32 1, %s758_s13  ;;  %p658_p0 = scmp.ge.s32.totalorder %s762_s14, 1  ;;  %s762_s14 = sphi %s789_s14, %s14_s14   ;;  %s758_s13 = sphi %s787_s13, %s886_s13   ;;  %s754_s12 = sphi %s785_s12, %s885_s12  }
   0x3   : > { %p31_p1 = scmp.ge.s32.totalorder %s29_s15, 2  ;;  %p206_p2 = scmp.lt.s32.totalorder %s762_s14, 3 }
   0x5   : > { %s888_s15 = smov (%p31_p1, %s29_s15), 0  ;;  %p207_p3 = pnand %p658_p0, %p206_p2 }
   0x6   : > { %p262_p4 = scmp.lt.s32.totalorder (!%p207_p3), %s754_s12, 1  ;;  %v323_v0 = vlaneseq (!%p207_p3)  ;;  %v764_v14 = vmov (!%p207_p3), 0.0  }
   0x7   : > { %210 = sbr.rel (%p207_p3) target bundleno = 88 (0x58), region = 28 }
   0x8   : > { %v324_v1 = vshrl.u32 (!%p207_p3), %v323_v0, 7  ;;  %v326_v2 = vand.u32 (!%p207_p3), 127, %v323_v0 }
   0xa   : > { %v333_v3 = vmul.u32 (!%p207_p3), 128, %v324_v1 }
   0xc   : > { %v809_v4 = vadd.s32 (!%p207_p3), %v333_v3, %v326_v2 }
   0xe   : > { %s890_s12 = smov (!%p262_p4, %s754_s12), 1  ;;  %vm335_vm0 = vcmp.lt.s32.totalorder %v809_v4, 256 }
   0xf   : > { %s700_s16 = sshll.u32 %s890_s12, 5  ;;  %s661_s20 = sshll.u32 %s890_s12, 3  ;;  %v665_v52 = vsel %vm335_vm0, 1.0, %v764_v14 }
  0x10   : > { %s269_s19 = scalar_lea.vmem %s881_s0, %s700_s16  ;;  %s282_s23 = scalar_lea.vmem %s882_s1, %s661_s20 }
  0x11   : > { %v346_v5 = vld [vmem:[%s269_s19] sm:$0xff]  ;;  %v667_v6 = vld [vmem:[%s269_s19 + $0x8] sm:$0xff]  ;;  %v668_v7 = vld [vmem:[%s269_s19 + $0x10] sm:$0xff]  ;;  %s701_s24 = sshll.u32 %s890_s12, 4  ;;  %s702_s28 = smul.u32 96, %s890_s12 }
  0x12   : > { %v350_v8 = vmax.f32 %v346_v5, %v667_v6  ;;  %v328_v9 = vld [vmem:[%s282_s23] sm:$0xff]  ;;  %v669_v10 = vld [vmem:[%s269_s19 + $0x18] sm:$0xff]  ;;  %v360_v12 = vsel %vm335_vm0, %v346_v5, 0.0  ;;  %v367_v13 = vsel %vm335_vm0, %v667_v6, 0.0  ;;  %s826_s27 = scalar_lea.vmem %s884_s3, %s701_s24  ;;  %v374_v18 = vsel %vm335_vm0, %v668_v7, 0.0 }
  0x13   : > { %vm329_vm1 = vcmp.ne.s32.totalorder %v328_v9, 255  ;;  %v381_v19 = vsel %vm335_vm0, %v669_v10, 0.0  ;;  %s848_s4 = scalar_lea.vmem %s883_s2, %s702_s28 }
  0x14   : > { %v354_v11 = vmax.f32 %v350_v8, %v668_v7  ;;  %vm338_vm2 = vmand %vm329_vm1, %vm335_vm0 }
  0x15   : > { %v828_v15 = vsel %vm338_vm2, 1.0, %v764_v14  ;;  %v341_v16 = vsel %vm338_vm2, %v328_v9, 0 }
  0x16   : > { %v358_v17 = vmax.f32 %v354_v11, %v669_v10  ;;  %vm342_vm3 = vcmp.gt.s32.totalorder %v341_v16, 0  ;;  %675 = vst [vmem:[%s826_s27 + $0x8] sm:$0xff] %v828_v15 }
  0x17   : > { %v343_v20 = vsel %vm342_vm3, %v341_v16, 0 }
  0x18   : > { %v359_v21 = vsel %vm335_vm0, %v358_v17, 0.0  ;;  %vm344_vm4 = vcmp.lt.s32.totalorder %v343_v20, 3 }
  0x19   : > { %v361_v22 = vsub.f32 %v360_v12, %v359_v21  ;;  %v368_v23 = vsub.f32 %v367_v13, %v359_v21  ;;  %v375_v24 = vsub.f32 %v374_v18, %v359_v21  ;;  %v345_v25 = vsel %vm344_vm4, %v343_v20, 3 }
  0x1a   : > { %v382_v26 = vsub.f32 %v381_v19, %v359_v21  ;;  %vm365_vm5 = vcmp.eq.s32.totalorder %v345_v25, 0  ;;  %vm372_vm6 = vcmp.eq.s32.totalorder %v345_v25, 1  ;;  %vm379_vm7 = vcmp.eq.s32.totalorder %v345_v25, 2 }
  0x1b   : > { %v362_v27 = vmul.f32 1.442695, %v361_v22  ;;  %v369_v28 = vmul.f32 1.442695, %v368_v23  ;;  %v376_v29 = vmul.f32 1.442695, %v375_v24 }
  0x1c   : > { %v383_v30 = vmul.f32 1.442695, %v382_v26  ;;  %vm386_vm8 = vcmp.eq.s32.totalorder %v345_v25, 3  ;;  %v670_v31 = vsel %vm365_vm5, 1.0, %v764_v14  ;;  %v671_v32 = vsel %vm372_vm6, 1.0, %v764_v14 }
  0x1d   : > { %728 = vpow2.f32 %v362_v27  ;;  %v672_v33 = vsel %vm379_vm7, 1.0, %v764_v14  ;;  %v406_v34 = vmul.f32 %v670_v31, %v828_v15  ;;  %v414_v35 = vmul.f32 %v671_v32, %v828_v15 }
  0x1e   : > { %730 = vpow2.f32 %v369_v28  ;;  %v422_v36 = vmul.f32 %v672_v33, %v828_v15  ;;  %v673_v37 = vsel %vm386_vm8, 1.0, %v764_v14 }
  0x1f   : > { %732 = vpow2.f32 %v376_v29  ;;  %v430_v38 = vmul.f32 %v673_v37, %v828_v15  ;;  %679 = vst [vmem:[%s848_s4 + $0x40] sm:$0xff] %v406_v34  ;;  %685 = vst [vmem:[%s848_s4 + $0x48] sm:$0xff] %v414_v35 }
  0x20   : > { %734 = vpow2.f32 %v383_v30  ;;  %691 = vst [vmem:[%s848_s4 + $0x50] sm:$0xff] %v422_v36 }
  0x21   : > { %697 = vst [vmem:[%s848_s4 + $0x58] sm:$0xff] %v430_v38 }
  0x27   : > { %v729_v39 = vpop.eup %728 }
  0x28   : > { %v731_v40 = vpop.eup %730  ;;  %v366_v46 = vsel %vm365_vm5, %v729_v39, 0.0 }
  0x29   : > { %v733_v41 = vpop.eup %732  ;;  %v371_v42 = vadd.f32 %v731_v40, %v729_v39  ;;  %v373_v47 = vsel %vm372_vm6, %v731_v40, %v366_v46 }
  0x2a   : > { %v735_v43 = vpop.eup %734  ;;  %v380_v49 = vsel %vm379_vm7, %v733_v41, %v373_v47 }
  0x2b   : > { %v378_v44 = vadd.f32 %v733_v41, %v371_v42  ;;  %v387_v53 = vsel %vm386_vm8, %v735_v43, %v380_v49 }
  0x2d   : > { %v385_v45 = vadd.f32 %v735_v43, %v378_v44 }
  0x2f   : > { %736 = vrcp.f32 %v385_v45 }
  0x39   : > { %v737_v48 = vpop.eup %736 }
  0x3a   : > { %v389_v50 = vmul.f32 %v737_v48, %v385_v45 }
  0x3c   : > { %v390_v51 = vsub.f32 2.0, %v389_v50 }
  0x3e   : > { %v391_v54 = vmul.f32 %v737_v48, %v390_v51 }
  0x40   : > { %v392_v55 = vmul.f32 %v391_v54, %v387_v53  ;;  %v402_v56 = vmul.f32 %v665_v52, %v391_v54 }
  0x42   : > { %v393_v57 = vmax.f32 %v392_v55, 1e-38  ;;  %v403_v58 = vmul.f32 %v729_v39, %v402_v56  ;;  %v411_v59 = vmul.f32 %v731_v40, %v402_v56  ;;  %v419_v60 = vmul.f32 %v733_v41, %v402_v56 }
  0x43   : > { %v427_v61 = vmul.f32 %v735_v43, %v402_v56  ;;  %v398_v2 = vsub.f32 1.0, %v392_v55 }
  0x44   : > { %738 = vlog2.f32 %v393_v57  ;;  %v407_v62 = vmul.f32 %v406_v34, %v403_v58  ;;  %v415_v63 = vmul.f32 %v414_v35, %v411_v59  ;;  %v423_v0 = vmul.f32 %v422_v36, %v419_v60  ;;  %677 = vst [vmem:[%s848_s4 + $0x20] sm:$0xff] %v403_v58  ;;  %683 = vst [vmem:[%s848_s4 + $0x28] sm:$0xff] %v411_v59 }
  0x45   : > { %v431_v1 = vmul.f32 %v430_v38, %v427_v61  ;;  %689 = vst [vmem:[%s848_s4 + $0x30] sm:$0xff] %v419_v60  ;;  %695 = vst [vmem:[%s848_s4 + $0x38] sm:$0xff] %v427_v61  ;;  %v399_v3 = vmax.f32 %v398_v2, 0.0 }
  0x46   : > { %446 = vst [vmem:[%s848_s4] sm:$0xff] %v407_v62  ;;  %681 = vst [vmem:[%s848_s4 + $0x8] sm:$0xff] %v415_v63 }
  0x47   : > { %687 = vst [vmem:[%s848_s4 + $0x10] sm:$0xff] %v423_v0  ;;  %693 = vst [vmem:[%s848_s4 + $0x18] sm:$0xff] %v431_v1  ;;  %v400_v7 = vmul.f32 %v399_v3, %v399_v3 }
  0x4e   : > { %v739_v4 = vpop.eup %738 }
  0x4f   : > { %v395_v5 = vmul.f32 0.6931472, %v739_v4 }
  0x51   : > { %v396_v6 = vsub.f32 0.0, %v395_v5 }
  0x53   : > { %v397_v8 = vmul.f32 %v828_v15, %v396_v6 }
  0x55   : > { %v401_v9 = vmul.f32 %v400_v7, %v397_v8 }
  0x57   : > { %439 = vst [vmem:[%s826_s27] sm:$0xff] %v401_v9 }
  0x58 PF: > { %s14_s14 = sadd.s32 1, %s762_s14   ;;  %s885_s12 = smov %s758_s13 }
  0x59   : > { %p11_p5 = scmp.ge.s32.totalorder %s14_s14, 4   ;;  %s886_s13 = smov %s888_s15 }
  0x5b   :  { %13 = sbr.rel (!%p11_p5) target bundleno = 2 (0x2), region = 92 }

</bundles_post_ra>
